<compile_context>
chip_gen: v7x
topology: tpu7x:2x2x1
jax: 0.10.0
libtpu: 0.0.40
codegen_flags: <defaults>
</compile_context>

<pallas_src>
import functools

import jax
import jax.numpy as jnp
import numpy as np
from jax.experimental import pallas as pl
from jax.experimental.pallas import tpu as pltpu


def _round_up(x, m):
    return ((x + m - 1) // m) * m


# ---------------------------------------------------------------------------
# Generation-aware VMEM budgeting and tile selection.
# ---------------------------------------------------------------------------
def _vmem_capacity_bytes():
    try:
        return int(pltpu.get_tpu_info().vmem_capacity_bytes)
    except Exception:
        # Conservative fallback (works on every generation, incl. v7x 64 MiB).
        return 64 << 20


def _budgets(b, itemsize1, itemsize2):
    cap = _vmem_capacity_bytes()
    # Request a generous but safe scoped-VMEM limit; leave headroom for the
    # compiler's internal scratch.  v7x (64 MiB) -> 48 MiB, v5e/v6e -> 100 MiB.
    vmem_limit = max(32 << 20, min(cap - (16 << 20), 100 << 20))
    # ~60% of the limit goes to the streamed-input pipeline buffers; the rest
    # covers the two (B, B) Gram accumulators, the output tile and slack.
    b_pad = _round_up(max(b, 1), 8)
    gram_bytes = 2 * b_pad * _round_up(max(b, 1), 128) * 4
    stream_budget = max((vmem_limit * 6) // 10 - gram_bytes, 1 << 20)
    # 2 streamed inputs x 2 pipeline buffers each.
    per_buf = max(stream_budget // 4, 1)
    return vmem_limit, per_buf


def _pick_tile(d, b, itemsize, per_buf_bytes):
    """Largest 128-multiple lane tile whose per-buffer bytes fit the budget."""
    b_pad = _round_up(max(b, 1), 8)            # sublane padding in VMEM
    lanes_cap = per_buf_bytes // max(b_pad * itemsize, 1)
    tk_cap = max(128, (lanes_cap // 128) * 128)
    return min(_round_up(d, 128), tk_cap)


def _x_index_map(nt, grid_n):
    """Index map for a streamed input; clamps when this input has fewer tiles
    than the (shared) grid so the block index stays valid and is not re-DMA'd."""
    if nt >= grid_n:
        return lambda t: (0, t)
    last = nt - 1
    return lambda t: (0, jnp.minimum(t, last))


# ---------------------------------------------------------------------------
# In-kernel helpers.
# ---------------------------------------------------------------------------
def _centered_gram(x, *, mask_valid=None):
    """(B, tk) tile -> (B, B) Gram of the batch-centered (optionally masked) tile."""
    x = x.astype(jnp.float32)                      # cast in-kernel (bf16 inputs ok)
    if mask_valid is not None:                     # only on the partial tail tile
        lane = jax.lax.broadcasted_iota(jnp.int32, x.shape, 1)
        x = jnp.where(lane < mask_valid, x, 0.0)   # zero padded / OOB lanes
    xc = x - jnp.mean(x, axis=0, keepdims=True)    # per-column batch mean
    # (B, tk) x (B, tk) contracted over the lane axis -> (B, B), f32 acc (MXU).
    return jax.lax.dot_general(
        xc, xc,
        dimension_numbers=(((1,), (1,)), ((), ())),
        preferred_element_type=jnp.float32,
    )


def _accumulate_gram(g_ref, x_ref, t, *, d, tk, nt, grid_n):
    """Fold the current (B, tk) tile of one input into its (B, B) Gram acc.

    Full tiles skip the lane mask entirely; only the partial tail tile (if any)
    pays for the iota + select.  Grid steps past this input's extent are skipped.
    """
    has_tail = (d % tk) != 0
    n_full = nt - 1 if has_tail else nt

    def add_full():
        g_ref[...] += _centered_gram(x_ref[...])

    def add_tail():
        g_ref[...] += _centered_gram(x_ref[...], mask_valid=d - (nt - 1) * tk)

    if n_full == grid_n:                  # every grid step is a full, in-range tile
        add_full()
    elif n_full > 0:
        pl.when(t < n_full)(add_full)
    if has_tail:
        pl.when(t == nt - 1)(add_tail)


def _normalize_gram(graw):
    """Scale the raw centered Gram by outer(1/(norm+1e-6)); norms = sqrt(diag)."""
    b = graw.shape[0]
    row = jax.lax.broadcasted_iota(jnp.int32, (b, b), 0)
    col = jax.lax.broadcasted_iota(jnp.int32, (b, b), 1)
    eye = (row == col).astype(jnp.float32)
    diag_col = jnp.sum(graw * eye, axis=1, keepdims=True)    # (B, 1)
    diag_row = jnp.sum(graw * eye, axis=0, keepdims=True)    # (1, B)
    s_col = 1.0 / (jnp.sqrt(diag_col) + 1e-6)
    s_row = 1.0 / (jnp.sqrt(diag_row) + 1e-6)
    return graw * s_col * s_row


# ---------------------------------------------------------------------------
# Fused kernel: stream x1 and x2 tiles in the same grid, accumulate both (B,B)
# Grams in VMEM scratch, normalize + combine into the scalar loss at the end.
# ---------------------------------------------------------------------------
def _diff_loss_kernel(x1_ref, x2_ref, o_ref, g1_ref, g2_ref, *,
                      d1, d2, tk1, tk2, nt1, nt2, grid_n, inv_denom):
    t = pl.program_id(0)

    @pl.when(t == 0)
    def _():
        g1_ref[...] = jnp.zeros_like(g1_ref)
        g2_ref[...] = jnp.zeros_like(g2_ref)

    _accumulate_gram(g1_ref, x1_ref, t, d=d1, tk=tk1, nt=nt1, grid_n=grid_n)
    _accumulate_gram(g2_ref, x2_ref, t, d=d2, tk=tk2, nt=nt2, grid_n=grid_n)

    @pl.when(t == grid_n - 1)
    def _():
        g1n = _normalize_gram(g1_ref[...])
        g2n = _normalize_gram(g2_ref[...])
        prod = g1n * g2n                                        # (B, B)
        total = jnp.sum(jnp.sum(prod, axis=1, keepdims=True),
                        axis=0, keepdims=True)                  # (1, 1)
        o_ref[...] = total * jnp.float32(inv_denom)


# ---------------------------------------------------------------------------
# Wrapper.
# ---------------------------------------------------------------------------
def diff_loss(input1, input2):
    """Pallas implementation of DiffLoss.forward (returns a scalar f32)."""
    b = input1.shape[0]
    x1 = input1.reshape(b, -1)   # keep native dtype in HBM; cast in-kernel
    x2 = input2.reshape(b, -1)
    d1, d2 = x1.shape[1], x2.shape[1]

    isz1 = x1.dtype.itemsize
    isz2 = x2.dtype.itemsize
    vmem_limit, per_buf = _budgets(b, isz1, isz2)
    tk1 = _pick_tile(d1, b, isz1, per_buf)
    tk2 = _pick_tile(d2, b, isz2, per_buf)
    nt1 = pl.cdiv(d1, tk1)
    nt2 = pl.cdiv(d2, tk2)
    grid_n = max(nt1, nt2)

    kernel = functools.partial(
        _diff_loss_kernel,
        d1=d1, d2=d2, tk1=tk1, tk2=tk2, nt1=nt1, nt2=nt2, grid_n=grid_n,
        inv_denom=1.0 / float(d1 * d2))

    loss = pl.pallas_call(
        kernel,
        out_shape=jax.ShapeDtypeStruct((1, 1), jnp.float32),
        grid_spec=pltpu.PrefetchScalarGridSpec(
            num_scalar_prefetch=0,
            grid=(grid_n,),
            in_specs=[
                pl.BlockSpec((b, tk1), _x_index_map(nt1, grid_n)),
                pl.BlockSpec((b, tk2), _x_index_map(nt2, grid_n)),
            ],
            out_specs=pl.BlockSpec((1, 1), lambda t: (0, 0)),
            scratch_shapes=[pltpu.VMEM((b, b), jnp.float32),
                            pltpu.VMEM((b, b), jnp.float32)],
        ),
        compiler_params=pltpu.CompilerParams(
            dimension_semantics=("arbitrary",),
            vmem_limit_bytes=int(vmem_limit),
        ),
    )(x1, x2)
    return loss[0, 0]


# ---------------------------------------------------------------------------
# Pure-JAX reference (mirrors the PyTorch forward) for the correctness check.
# NOTE: tile-wise f32 accumulation changes summation order vs this reference;
# results agree to ~1e-5 rtol.
# ---------------------------------------------------------------------------
def diff_loss_ref(input1, input2):
    b = input1.shape[0]
    x1 = input1.reshape(b, -1).astype(jnp.float32)
    x2 = input2.reshape(b, -1).astype(jnp.float32)
    x1 = x1 - jnp.mean(x1, axis=0, keepdims=True)
    x2 = x2 - jnp.mean(x2, axis=0, keepdims=True)
    n1 = jnp.linalg.norm(x1, axis=1, keepdims=True)
    n2 = jnp.linalg.norm(x2, axis=1, keepdims=True)
    x1n = x1 / (n1 + 1e-6)
    x2n = x2 / (n2 + 1e-6)
    g = x1n.T @ x2n
    return jnp.mean(g ** 2)


if __name__ == "__main__":
    key = jax.random.PRNGKey(0)
    k1, k2, k3, k4 = jax.random.split(key, 4)

    # Primary case: two NCHW-like feature tensors (DiffLoss has no parameters).
    input1 = jax.random.normal(k1, (2, 4, 16, 16), dtype=jnp.float32)
    input2 = jax.random.normal(k2, (2, 4, 16, 16), dtype=jnp.float32)
    out = jax.block_until_ready(diff_loss(input1, input2))
    ref = jax.block_until_ready(diff_loss_ref(input1, input2))
    assert np.isfinite(np.asarray(out)), "non-finite output"
    np.testing.assert_allclose(np.asarray(out), np.asarray(ref),
                               rtol=1e-5, atol=1e-7)

    # Secondary case: unequal feature dims + a non-128-multiple tail tile.
    input3 = jax.random.normal(k3, (2, 4, 16, 16), dtype=jnp.float32)
    input4 = jax.random.normal(k4, (2, 3, 10, 10), dtype=jnp.float32)
    out2 = jax.block_until_ready(diff_loss(input3, input4))
    ref2 = jax.block_until_ready(diff_loss_ref(input3, input4))
    assert np.isfinite(np.asarray(out2)), "non-finite output (tail case)"
    np.testing.assert_allclose(np.asarray(out2), np.asarray(ref2),
                               rtol=1e-5, atol=1e-7)

    print("KERNEL_OK")
</pallas_src>

<mosaic_0001>
module attributes {stable_mosaic.version = 11 : i64} {
  func.func @_diff_loss_kernel(%arg0: i32, %arg1: memref<2x1024xf32, #tpu.memory_space<vmem>>, %arg2: memref<2x1024xf32, #tpu.memory_space<vmem>>, %arg3: memref<1x1xf32, #tpu.memory_space<vmem>>, %arg4: memref<2x2xf32, #tpu.memory_space<vmem>>, %arg5: memref<2x2xf32, #tpu.memory_space<vmem>>) attributes {dimension_semantics = [#tpu.dimension_semantics<arbitrary>], iteration_bounds = array<i64: 1>, scalar_prefetch = 0 : i64, scratch_operands = 2 : i64, tpu.core_type = #tpu.core_type<tc>, window_params = [{transform_indices = @transform_0, window_bounds = array<i64: 2, 1024>}, {transform_indices = @transform_1, window_bounds = array<i64: 2, 1024>}, {pipeline_mode = #tpu.pipeline_mode<synchronous>, transform_indices = @transform_2, window_bounds = array<i64: 1, 1>}]} {
    %c0_i32 = arith.constant 0 : i32
    %0 = arith.cmpi eq, %arg0, %c0_i32 : i32
    %1 = arith.extui %0 : i1 to i32
    %c0_i32_0 = arith.constant 0 : i32
    %2 = arith.cmpi ne, %1, %c0_i32_0 : i32
    scf.if %2 {
      %cst_19 = arith.constant 0.000000e+00 : f32
      %28 = vector.broadcast %cst_19 : f32 to vector<2x2xf32>
      %c0_20 = arith.constant 0 : index
      %c0_21 = arith.constant 0 : index
      %29 = vector.load %arg4[%c0_20, %c0_21] : memref<2x2xf32, #tpu.memory_space<vmem>>, vector<2x2xf32>
      tpu.vector_store %arg4[%c0_20, %c0_21], %28 {strides = array<i32>} : memref<2x2xf32, #tpu.memory_space<vmem>>, vector<2x2xf32>,
      %cst_22 = arith.constant 0.000000e+00 : f32
      %30 = vector.broadcast %cst_22 : f32 to vector<2x2xf32>
      %c0_23 = arith.constant 0 : index
      %c0_24 = arith.constant 0 : index
      %31 = vector.load %arg5[%c0_23, %c0_24] : memref<2x2xf32, #tpu.memory_space<vmem>>, vector<2x2xf32>
      tpu.vector_store %arg5[%c0_23, %c0_24], %30 {strides = array<i32>} : memref<2x2xf32, #tpu.memory_space<vmem>>, vector<2x2xf32>,
    } else {
    }
    %c0 = arith.constant 0 : index
    %c0_1 = arith.constant 0 : index
    %3 = vector.load %arg4[%c0, %c0_1] : memref<2x2xf32, #tpu.memory_space<vmem>>, vector<2x2xf32>
    %c0_2 = arith.constant 0 : index
    %c0_3 = arith.constant 0 : index
    %4 = vector.load %arg1[%c0_2, %c0_3] : memref<2x1024xf32, #tpu.memory_space<vmem>>, vector<2x1024xf32>
    %cst = arith.constant dense<0.000000e+00> : vector<1024xf32>
    %5 = vector.multi_reduction <add>, %4, %cst [0] : vector<2x1024xf32> to vector<1024xf32>
    %6 = vector.shape_cast %5 : vector<1024xf32> to vector<1x1024xf32>
    %cst_4 = arith.constant 2.000000e+00 : f32
    %7 = vector.broadcast %cst_4 : f32 to vector<1x1024xf32>
    %8 = arith.divf %6, %7 : vector<1x1024xf32>
    %9 = vector.broadcast %8 : vector<1x1024xf32> to vector<2x1024xf32>
    %10 = arith.subf %4, %9 : vector<2x1024xf32>
    %cst_5 = arith.constant dense<0.000000e+00> : vector<2x2xf32>
    %11 = tpu.matmul %10, %10, %cst_5 {dimension_numbers = #tpu.dot_dimension_numbers<[1], [1], [0], [0], [0, 0, 1, 0], [], []>} : vector<2x1024xf32>, vector<2x1024xf32>, vector<2x2xf32> -> vector<2x2xf32>
    %12 = arith.addf %3, %11 : vector<2x2xf32>
    %c0_6 = arith.constant 0 : index
    %c0_7 = arith.constant 0 : index
    %13 = vector.load %arg4[%c0_6, %c0_7] : memref<2x2xf32, #tpu.memory_space<vmem>>, vector<2x2xf32>
    tpu.vector_store %arg4[%c0_6, %c0_7], %12 {strides = array<i32>} : memref<2x2xf32, #tpu.memory_space<vmem>>, vector<2x2xf32>,
    %c0_8 = arith.constant 0 : index
    %c0_9 = arith.constant 0 : index
    %14 = vector.load %arg5[%c0_8, %c0_9] : memref<2x2xf32, #tpu.memory_space<vmem>>, vector<2x2xf32>
    %c0_10 = arith.constant 0 : index
    %c0_11 = arith.constant 0 : index
    %15 = vector.load %arg2[%c0_10, %c0_11] : memref<2x1024xf32, #tpu.memory_space<vmem>>, vector<2x1024xf32>
    %cst_12 = arith.constant dense<0.000000e+00> : vector<1024xf32>
    %16 = vector.multi_reduction <add>, %15, %cst_12 [0] : vector<2x1024xf32> to vector<1024xf32>
    %17 = vector.shape_cast %16 : vector<1024xf32> to vector<1x1024xf32>
    %cst_13 = arith.constant 2.000000e+00 : f32
    %18 = vector.broadcast %cst_13 : f32 to vector<1x1024xf32>
    %19 = arith.divf %17, %18 : vector<1x1024xf32>
    %20 = vector.broadcast %19 : vector<1x1024xf32> to vector<2x1024xf32>
    %21 = arith.subf %15, %20 : vector<2x1024xf32>
    %cst_14 = arith.constant dense<0.000000e+00> : vector<2x2xf32>
    %22 = tpu.matmul %21, %21, %cst_14 {dimension_numbers = #tpu.dot_dimension_numbers<[1], [1], [0], [0], [0, 0, 1, 0], [], []>} : vector<2x1024xf32>, vector<2x1024xf32>, vector<2x2xf32> -> vector<2x2xf32>
    %23 = arith.addf %14, %22 : vector<2x2xf32>
    %c0_15 = arith.constant 0 : index
    %c0_16 = arith.constant 0 : index
    %24 = vector.load %arg5[%c0_15, %c0_16] : memref<2x2xf32, #tpu.memory_space<vmem>>, vector<2x2xf32>
    tpu.vector_store %arg5[%c0_15, %c0_16], %23 {strides = array<i32>} : memref<2x2xf32, #tpu.memory_space<vmem>>, vector<2x2xf32>,
    %c0_i32_17 = arith.constant 0 : i32
    %25 = arith.cmpi eq, %arg0, %c0_i32_17 : i32
    %26 = arith.extui %25 : i1 to i32
    %c0_i32_18 = arith.constant 0 : i32
    %27 = arith.cmpi ne, %26, %c0_i32_18 : i32
    scf.if %27 {
      %c0_19 = arith.constant 0 : index
      %c0_20 = arith.constant 0 : index
      %28 = vector.load %arg4[%c0_19, %c0_20] : memref<2x2xf32, #tpu.memory_space<vmem>>, vector<2x2xf32>
      %29 = tpu.iota {dimensions = array<i32: 0>} : vector<2x2xi32>
      %30 = tpu.iota {dimensions = array<i32: 1>} : vector<2x2xi32>
      %31 = arith.cmpi eq, %29, %30 : vector<2x2xi32>
      %32 = arith.extui %31 : vector<2x2xi1> to vector<2x2xi32>
      %33 = arith.sitofp %32 : vector<2x2xi32> to vector<2x2xf32>
      %34 = arith.mulf %28, %33 : vector<2x2xf32>
      %cst_21 = arith.constant dense<0.000000e+00> : vector<2xf32>
      %35 = vector.multi_reduction <add>, %34, %cst_21 [1] : vector<2x2xf32> to vector<2xf32>
      %36 = vector.shape_cast %35 : vector<2xf32> to vector<2x1xf32>
      %37 = arith.mulf %28, %33 : vector<2x2xf32>
      %cst_22 = arith.constant dense<0.000000e+00> : vector<2xf32>
      %38 = vector.multi_reduction <add>, %37, %cst_22 [0] : vector<2x2xf32> to vector<2xf32>
      %39 = vector.shape_cast %38 : vector<2xf32> to vector<1x2xf32>
      %40 = math.sqrt %36 : vector<2x1xf32>
      %cst_23 = arith.constant 9.99999997E-7 : f32
      %41 = vector.broadcast %cst_23 : f32 to vector<2x1xf32>
      %42 = arith.addf %40, %41 : vector<2x1xf32>
      %cst_24 = arith.constant 1.000000e+00 : f32
      %43 = vector.broadcast %cst_24 : f32 to vector<2x1xf32>
      %44 = arith.divf %43, %42 : vector<2x1xf32>
      %45 = math.sqrt %39 : vector<1x2xf32>
      %cst_25 = arith.constant 9.99999997E-7 : f32
      %46 = vector.broadcast %cst_25 : f32 to vector<1x2xf32>
      %47 = arith.addf %45, %46 : vector<1x2xf32>
      %cst_26 = arith.constant 1.000000e+00 : f32
      %48 = vector.broadcast %cst_26 : f32 to vector<1x2xf32>
      %49 = arith.divf %48, %47 : vector<1x2xf32>
      %50 = vector.broadcast %44 : vector<2x1xf32> to vector<2x2xf32>
      %51 = arith.mulf %28, %50 : vector<2x2xf32>
      %52 = vector.broadcast %49 : vector<1x2xf32> to vector<2x2xf32>
      %53 = arith.mulf %51, %52 : vector<2x2xf32>
      %c0_27 = arith.constant 0 : index
      %c0_28 = arith.constant 0 : index
      %54 = vector.load %arg5[%c0_27, %c0_28] : memref<2x2xf32, #tpu.memory_space<vmem>>, vector<2x2xf32>
      %55 = tpu.iota {dimensions = array<i32: 0>} : vector<2x2xi32>
      %56 = tpu.iota {dimensions = array<i32: 1>} : vector<2x2xi32>
      %57 = arith.cmpi eq, %55, %56 : vector<2x2xi32>
      %58 = arith.extui %57 : vector<2x2xi1> to vector<2x2xi32>
      %59 = arith.sitofp %58 : vector<2x2xi32> to vector<2x2xf32>
      %60 = arith.mulf %54, %59 : vector<2x2xf32>
      %cst_29 = arith.constant dense<0.000000e+00> : vector<2xf32>
      %61 = vector.multi_reduction <add>, %60, %cst_29 [1] : vector<2x2xf32> to vector<2xf32>
      %62 = vector.shape_cast %61 : vector<2xf32> to vector<2x1xf32>
      %63 = arith.mulf %54, %59 : vector<2x2xf32>
      %cst_30 = arith.constant dense<0.000000e+00> : vector<2xf32>
      %64 = vector.multi_reduction <add>, %63, %cst_30 [0] : vector<2x2xf32> to vector<2xf32>
      %65 = vector.shape_cast %64 : vector<2xf32> to vector<1x2xf32>
      %66 = math.sqrt %62 : vector<2x1xf32>
      %cst_31 = arith.constant 9.99999997E-7 : f32
      %67 = vector.broadcast %cst_31 : f32 to vector<2x1xf32>
      %68 = arith.addf %66, %67 : vector<2x1xf32>
      %cst_32 = arith.constant 1.000000e+00 : f32
      %69 = vector.broadcast %cst_32 : f32 to vector<2x1xf32>
      %70 = arith.divf %69, %68 : vector<2x1xf32>
      %71 = math.sqrt %65 : vector<1x2xf32>
      %cst_33 = arith.constant 9.99999997E-7 : f32
      %72 = vector.broadcast %cst_33 : f32 to vector<1x2xf32>
      %73 = arith.addf %71, %72 : vector<1x2xf32>
      %cst_34 = arith.constant 1.000000e+00 : f32
      %74 = vector.broadcast %cst_34 : f32 to vector<1x2xf32>
      %75 = arith.divf %74, %73 : vector<1x2xf32>
      %76 = vector.broadcast %70 : vector<2x1xf32> to vector<2x2xf32>
      %77 = arith.mulf %54, %76 : vector<2x2xf32>
      %78 = vector.broadcast %75 : vector<1x2xf32> to vector<2x2xf32>
      %79 = arith.mulf %77, %78 : vector<2x2xf32>
      %80 = arith.mulf %53, %79 : vector<2x2xf32>
      %cst_35 = arith.constant dense<0.000000e+00> : vector<2xf32>
      %81 = vector.multi_reduction <add>, %80, %cst_35 [1] : vector<2x2xf32> to vector<2xf32>
      %82 = vector.shape_cast %81 : vector<2xf32> to vector<2x1xf32>
      %cst_36 = arith.constant dense<0.000000e+00> : vector<1xf32>
      %83 = vector.multi_reduction <add>, %82, %cst_36 [0] : vector<2x1xf32> to vector<1xf32>
      %84 = vector.shape_cast %83 : vector<1xf32> to vector<1x1xf32>
      %cst_37 = arith.constant 9.53674316E-7 : f32
      %85 = vector.broadcast %cst_37 : f32 to vector<1x1xf32>
      %86 = arith.mulf %84, %85 : vector<1x1xf32>
      %c0_38 = arith.constant 0 : index
      %c0_39 = arith.constant 0 : index
      %87 = vector.load %arg3[%c0_38, %c0_39] : memref<1x1xf32, #tpu.memory_space<vmem>>, vector<1x1xf32>
      tpu.vector_store %arg3[%c0_38, %c0_39], %86 {strides = array<i32>} : memref<1x1xf32, #tpu.memory_space<vmem>>, vector<1x1xf32>,
    } else {
    }
    return
  }
  func.func @transform_0(%arg0: i32) -> (i32, i32) {
    %c0_i32 = arith.constant 0 : i32
    %c0_i32_0 = arith.constant 0 : i32
    return %c0_i32, %arg0 : i32, i32
  }
  func.func @transform_1(%arg0: i32) -> (i32, i32) {
    %c0_i32 = arith.constant 0 : i32
    %c0_i32_0 = arith.constant 0 : i32
    return %c0_i32, %arg0 : i32, i32
  }
  func.func @transform_2(%arg0: i32) -> (i32, i32) {
    %c0_i32 = arith.constant 0 : i32
    %c0_i32_0 = arith.constant 0 : i32
    %c0_i32_1 = arith.constant 0 : i32
    return %c0_i32, %c0_i32_0 : i32, i32
  }
}

</mosaic_0001>

<bundles_post_ra>
// kernel: tpu_custom_call.1
= control target key start
LH: loop header
LB: loop body
LE: loop exit
PB: predicated region body
PF: predicated region fallthrough
CT: control target
= control target key end

     0   :  { %7 = vsyncpa [#allocation5], 0  ;;  %s1374_s0 = inlined_call_operand.hbm [shape: f32[2,1024], index: 0, kind: input, shape index: {}]   ;;  %s1375_s1 = inlined_call_operand.hbm [shape: f32[2,1024], index: 1, kind: input, shape index: {}]   ;;  %s1376_s2 = inlined_call_operand.hbm [shape: f32[1,1], index: 2, kind: output, shape index: {}]  }
   0x1   :  { %8 = vsyncpa [#allocation8], 0 }
   0x2   :  { %9 = vsyncpa [#allocation6], 0  ;;  %s1216_s9 = smov [#allocation4]   ;;  %s1217_s11 = smov [#allocation7]  }
   0x3   :  { %s16_s10 = sshll.u32 %s1216_s9, 4  ;;  %s26_s12 = sshll.u32 %s1217_s11, 4  ;;  %s17_s10 = int_to_ptr.vmem [resolvable:$true] %s16_s10  ;;  %s27_s12 = int_to_ptr.vmem [resolvable:$true] %s26_s12 }
   0x4   :  { %s1144_s15 = scalar_lea.hbm %s1374_s0, 256 }
   0x5   :  { %p1145_p0 = scmp.ne.s32.totalorder %s1374_s0, %s1144_s15  ;;  %p1148_p1 = scmp.lt.u32.totalorder %s1144_s15, %s1374_s0 }
   0x7   :  { %p1150_p2 = pnand %p1148_p1, %p1145_p0 }
   0x9   :  { %1153 = shalt.err (!%p1150_p2)
}
   0xa   :  { %s1154_s20 = scalar_lea.vmem %s17_s10, 256  ;;  %p1159_p4 = scmp.lt.s32.totalorder %s17_s10, %s17_s10 }
   0xb   :  { %p1155_p3 = scmp.ne.s32.totalorder %s17_s10, %s1154_s20  ;;  %p1160_p5 = scmp.lt.s32.totalorder %s1154_s20, %s1154_s20 }
   0xd   :  { %p1161_p6 = por %p1160_p5, %p1159_p4 }
   0xf   :  { %p1162_p7 = pnand %p1161_p6, %p1155_p3 }
  0x11   :  { %1165 = shalt.err (!%p1162_p7)
}
  0x12   :  { %19 = dma.hbm_to_vmem [thread:$0]  %s1374_s0, 256, %s17_s10, [#allocation5]  }
  0x13   :  { %s1166_s25 = scalar_lea.hbm %s1375_s1, 256 }
  0x14   :  { %p1167_p8 = scmp.ne.s32.totalorder %s1375_s1, %s1166_s25  ;;  %p1170_p9 = scmp.lt.u32.totalorder %s1166_s25, %s1375_s1 }
  0x16   :  { %p1172_p10 = pnand %p1170_p9, %p1167_p8 }
  0x18   :  { %1175 = shalt.err (!%p1172_p10)
}
  0x19   :  { %s1176_s30 = scalar_lea.vmem %s27_s12, 256  ;;  %p1181_p12 = scmp.lt.s32.totalorder %s27_s12, %s27_s12 }
  0x1a   :  { %p1177_p11 = scmp.ne.s32.totalorder %s27_s12, %s1176_s30  ;;  %p1182_p13 = scmp.lt.s32.totalorder %s1176_s30, %s1176_s30 }
  0x1c   :  { %p1183_p0 = por %p1182_p13, %p1181_p12 }
  0x1e   :  { %p1184_p1 = pnand %p1183_p0, %p1177_p11 }
  0x20   :  { %1187 = shalt.err (!%p1184_p1)
}
  0x21   :  { %29 = dma.hbm_to_vmem [thread:$0]  %s1375_s1, 256, %s27_s12, [#allocation8]  }
  0x22   :  { %1210 = dma.done.wait [#allocation5], 256  }
  0x23   :  { %1211 = vsyncadd [#allocation5], 4294967040 }
  0x24   :  { %1212 = dma.done.wait [#allocation8], 256  }
  0x25   :  { %1213 = vsyncadd [#allocation8], 4294967040  ;;  %v52_v0 = vlaneseq  ;;  %v1218_v1 = vmov 1983009808   ;;  %v1266_v6 = vld [vmem:[#allocation4] sm:$0xff]  ;;  %vm90_vm0 = vcmask 1041408  }
  0x26   :  { %v50_v2 = vunpack.c.l.s4 %v1218_v1  ;;  %v1268_v7 = vld [vmem:[#allocation4 + $0x8] sm:$0xff]  ;;  %v1270_v8 = vld [vmem:[#allocation7] sm:$0xff]  ;;  %v48_v9 = vcombine.high %v1266_v6, %v1266_v6  ;;  %v1280_v13 = vld [vmem:[#allocation7 + $0x8] sm:$0xff]  ;;  %vm40_vm1 = vcmask 9216   ;;  %s1220_s1 = smov [#allocation9]   ;;  %vm1100_vm11 = vcmask 0  }
  0x27   :  { %v1261_v3 = vshrl.u32 %v52_v0, 7  ;;  %v65_v11 = vcombine.high %v1268_v7, %v1268_v7  ;;  %v534_v14 = vcombine.high %v1270_v8, %v1270_v8  ;;  %v551_v16 = vcombine.high %v1280_v13, %v1280_v13  ;;  %s1108_s4 = sshll.u32 %s1220_s1, 4  ;;  %s1109_s4 = int_to_ptr.vmem [resolvable:$true] %s1108_s4 }
  0x28   :  { %v51_v4 = vunpack.c.0.s8 %v50_v2  ;;  %s1188_s5 = scalar_lea.vmem %s1109_s4, 16  ;;  %s1192_s6 = scalar_lea.vmem %s1109_s4, 32 }
  0x29   :  { %p1189_p2 = scmp.ne.s32.totalorder %s1109_s4, %s1188_s5  ;;  %p1193_p3 = scmp.lt.s32.totalorder %s1109_s4, %s1109_s4 }
  0x2a   :  { %v1264_v5 = vsub.s32 %v51_v4, %v1261_v3  ;;  %p1194_p4 = scmp.lt.s32.totalorder %s1192_s6, %s1188_s5 }
  0x2c   :  { %v55_v10 = vrot.slane %v1266_v6, %v1264_v5  ;;  %v72_v12 = vrot.slane %v1268_v7, %v1264_v5  ;;  %v1286_v15 = vrot.slane %v1270_v8, %v1264_v5  ;;  %v1292_v17 = vrot.slane %v1280_v13, %v1264_v5  ;;  %p1195_p5 = por %p1194_p4, %p1193_p3 }
  0x2d   :  { %v62_v18 = vrot.slane %v48_v9, %v1264_v5  ;;  %v79_v21 = vrot.slane %v65_v11, %v1264_v5  ;;  %v1299_v25 = vrot.slane %v534_v14, %v1264_v5 }
  0x2e   :  { %v63_v19 = vcombine.high %v55_v10, %v55_v10  ;;  %v91_v20 = vsel %vm90_vm0, %v55_v10, 0.0  ;;  %v80_v23 = vcombine.high %v72_v12, %v72_v12  ;;  %v119_v24 = vsel %vm90_vm0, %v72_v12, 0.0  ;;  %p1196_p6 = pnand %p1195_p5, %p1189_p2 }
  0x2f   :  { %v92_v22 = vrot.slane %v91_v20, 4  ;;  %v64_v26 = vcombine.high %v62_v18, %v62_v18  ;;  %v105_v28 = vsel %vm90_vm0, %v62_v18, 0.0  ;;  %v81_v29 = vcombine.high %v79_v21, %v79_v21 }
  0x30   :  { %v98_v27 = vsel %vm90_vm0, %v63_v19, 0.0  ;;  %v106_v32 = vrot.slane %v105_v28, 4  ;;  %v120_v33 = vrot.slane %v119_v24, 4  ;;  %v126_v35 = vsel %vm90_vm0, %v80_v23, 0.0 }
  0x31   :  { %v93_v30 = vadd.f32 %v92_v22, %v91_v20  ;;  %v99_v31 = vrot.slane %v98_v27, 4  ;;  %v112_v34 = vsel %vm90_vm0, %v64_v26, 0.0  ;;  %v133_v36 = vsel %vm90_vm0, %v79_v21, 0.0 }
  0x32   :  { %v140_v37 = vsel %vm90_vm0, %v81_v29, 0.0  ;;  %v107_v40 = vadd.f32 %v106_v32, %v105_v28  ;;  %v113_v41 = vrot.slane %v112_v34, 4  ;;  %v121_v42 = vadd.f32 %v120_v33, %v119_v24 }
  0x33   :  { %v94_v38 = vrot.slane %v93_v30, 2  ;;  %v100_v39 = vadd.f32 %v99_v31, %v98_v27  ;;  %v127_v43 = vrot.slane %v126_v35, 4  ;;  %v134_v44 = vrot.slane %v133_v36, 4 }
  0x34   :  { %v141_v45 = vrot.slane %v140_v37, 4  ;;  %v108_v48 = vrot.slane %v107_v40, 2  ;;  %v114_v49 = vadd.f32 %v113_v41, %v112_v34  ;;  %v122_v50 = vrot.slane %v121_v42, 2 }
  0x35   :  { %v95_v46 = vadd.f32 %v94_v38, %v93_v30  ;;  %v101_v47 = vrot.slane %v100_v39, 2  ;;  %v128_v51 = vadd.f32 %v127_v43, %v126_v35  ;;  %v135_v52 = vadd.f32 %v134_v44, %v133_v36 }
  0x36   :  { %v142_v53 = vadd.f32 %v141_v45, %v140_v37  ;;  %v109_v56 = vadd.f32 %v108_v48, %v107_v40  ;;  %v115_v57 = vrot.slane %v114_v49, 2  ;;  %v123_v58 = vadd.f32 %v122_v50, %v121_v42 }
  0x37   :  { %v96_v54 = vrot.slane %v95_v46, 1  ;;  %v102_v55 = vadd.f32 %v101_v47, %v100_v39  ;;  %v129_v59 = vrot.slane %v128_v51, 2  ;;  %v136_v60 = vrot.slane %v135_v52, 2 }
  0x38   :  { %v143_v61 = vrot.slane %v142_v53, 2  ;;  %v110_v1 = vrot.slane %v109_v56, 1  ;;  %v116_v2 = vadd.f32 %v115_v57, %v114_v49  ;;  %v124_v4 = vrot.slane %v123_v58, 1 }
  0x39   :  { %v97_v62 = vadd.f32 %v96_v54, %v95_v46  ;;  %v103_v63 = vrot.slane %v102_v55, 1  ;;  %v130_v9 = vadd.f32 %v129_v59, %v128_v51  ;;  %v137_v10 = vadd.f32 %v136_v60, %v135_v52 }
  0x3a   :  { %v144_v11 = vadd.f32 %v143_v61, %v142_v53  ;;  %v111_v14 = vadd.f32 %v110_v1, %v109_v56  ;;  %v117_v18 = vrot.slane %v116_v2, 1  ;;  %v125_v20 = vadd.f32 %v124_v4, %v123_v58 }
  0x3b   :  { %v104_v12 = vadd.f32 %v103_v63, %v102_v55  ;;  %v148_v19 = vmul.f32 0.5, %v97_v62  ;;  %v131_v21 = vrot.slane %v130_v9, 1  ;;  %v138_v22 = vrot.slane %v137_v10, 1 }
  0x3c   :  { %v145_v23 = vrot.slane %v144_v11, 1  ;;  %v118_v24 = vadd.f32 %v117_v18, %v116_v2  ;;  %v150_v27 = vmul.f32 0.5, %v111_v14  ;;  %v549_v28 = vcombine.high %v1286_v15, %v1286_v15 }
  0x3d   :  { %v149_v26 = vmul.f32 0.5, %v104_v12  ;;  %v132_v29 = vadd.f32 %v131_v21, %v130_v9  ;;  %v139_v30 = vadd.f32 %v138_v22, %v137_v10  ;;  %v152_v32 = vmul.f32 0.5, %v125_v20 }
  0x3e   :  { %v146_v31 = vadd.f32 %v145_v23, %v144_v11  ;;  %v151_v33 = vmul.f32 0.5, %v118_v24  ;;  %v550_v35 = vcombine.high %v1299_v25, %v1299_v25  ;;  %v576_v36 = vsel %vm90_vm0, %v1286_v15, 0.0 }
  0x3f   :  { %v164_v34 = vcombine.low %v148_v19, %v149_v26  ;;  %v153_v37 = vmul.f32 0.5, %v132_v29  ;;  %v154_v38 = vmul.f32 0.5, %v139_v30  ;;  %v577_v40 = vrot.slane %v576_v36, 4 }
  0x40   :  { %v155_v39 = vmul.f32 0.5, %v146_v31  ;;  %v165_v41 = vcombine.low %v150_v27, %v151_v33  ;;  %v583_v43 = vsel %vm90_vm0, %v549_v28, 0.0  ;;  %v590_v44 = vsel %vm90_vm0, %v1299_v25, 0.0 }
  0x41   :  { %v172_v42 = vrot.slane %v164_v34, %v1264_v5  ;;  %v181_v45 = vcombine.low %v152_v32, %v153_v37  ;;  %v578_v47 = vadd.f32 %v577_v40, %v576_v36  ;;  %v584_v48 = vrot.slane %v583_v43, 4 }
  0x42   :  { %v182_v46 = vcombine.low %v154_v38, %v155_v39  ;;  %v179_v49 = vrot.slane %v165_v41, %v1264_v5  ;;  %v591_v50 = vrot.slane %v590_v44, 4  ;;  %v597_v15 = vsel %vm90_vm0, %v550_v35, 0.0 }
  0x43   :  { %v565_v51 = vrot.slane %v551_v16, %v1264_v5  ;;  %v189_v52 = vrot.slane %v181_v45, %v1264_v5  ;;  %v579_v54 = vrot.slane %v578_v47, 2  ;;  %v585_v25 = vadd.f32 %v584_v48, %v583_v43 }
  0x44   :  { %v196_v53 = vrot.slane %v182_v46, %v1264_v5  ;;  %v180_v55 = vcombine.low %v172_v42, %v179_v49  ;;  %v592_v56 = vadd.f32 %v591_v50, %v590_v44  ;;  %v598_v57 = vrot.slane %v597_v15, 4 }
  0x45   :  { %v566_v58 = vcombine.high %v1292_v17, %v1292_v17  ;;  %v580_v60 = vadd.f32 %v579_v54, %v578_v47  ;;  %v586_v61 = vrot.slane %v585_v25, 2  ;;  %v567_v62 = vcombine.high %v565_v51, %v565_v51 }
  0x46   :  { %v197_v59 = vcombine.low %v189_v52, %v196_v53  ;;  %v200_v63 = vsub.f32 %v1266_v6, %v180_v55  ;;  %v593_v1 = vrot.slane %v592_v56, 2  ;;  %v599_v16 = vadd.f32 %v598_v57, %v597_v15 }
  0x47   :  { %v604_v2 = vsel %vm90_vm0, %v1292_v17, 0.0  ;;  %v581_v9 = vrot.slane %v580_v60, 1  ;;  %v587_v10 = vadd.f32 %v586_v61, %v585_v25  ;;  %v611_v36 = vsel %vm90_vm0, %v566_v58, 0.0 }
  0x48   :  { %v201_v4 = vsub.f32 %v1268_v7, %v197_v59  ;;  %v605_v11 = vrot.slane %v604_v2, 4  ;;  %v211_v12 = vrot.slane %v200_v63, %v1264_v5  ;;  %v204_v14 = vcombine.high %v200_v63, %v200_v63 }
  0x49   :  { %v594_v18 = vadd.f32 %v593_v1, %v592_v56  ;;  %v600_v19 = vrot.slane %v599_v16, 2  ;;  %v582_v22 = vadd.f32 %v581_v9, %v580_v60  ;;  %v588_v6 = vrot.slane %v587_v10, 1 }
  0x4a   :  { %v228_v20 = vrot.slane %v201_v4, %v1264_v5  ;;  %v221_v21 = vcombine.high %v201_v4, %v201_v4  ;;  %v219_v23 = vcombine.high %v211_v12, %v211_v12  ;;  %v218_v24 = vrot.slane %v204_v14, %v1264_v5 }
  0x4b   :  { %v595_v26 = vrot.slane %v594_v18, 1  ;;  %v601_v17 = vadd.f32 %v600_v19, %v599_v16  ;;  %v589_v28 = vadd.f32 %v588_v6, %v587_v10  ;;  %v632_v29 = vmul.f32 0.5, %v582_v22 }
  0x4c   :  { %v236_v27 = vcombine.high %v228_v20, %v228_v20  ;;  %v235_v7 = vrot.slane %v221_v21, %v1264_v5  ;;  %246 = vmatprep.subr.mxu0 %v219_v23  ;;  %v220_v30 = vcombine.high %v218_v24, %v218_v24  ;;  %310 = vmatprep.mubr.f32.mxu0 %v219_v23  ;;  %v618_v37 = vsel %vm90_vm0, %v565_v51, 0.0 }
  0x4d   :  { %v596_v31 = vadd.f32 %v595_v26, %v594_v18  ;;  %v602_v32 = vrot.slane %v601_v17, 1  ;;  %v606_v33 = vadd.f32 %v605_v11, %v604_v2  ;;  %247 = vmatpush1.xpose.msra.mxu0 %v211_v12  ;;  %v633_v35 = vmul.f32 0.5, %v589_v28 }
  0x4e   :  { %v237_v34 = vcombine.high %v235_v7, %v235_v7  ;;  %316 = vmatprep.subr.mxu1 %v220_v30  ;;  %386 = vmatprep.subr.mxu0 %v236_v27  ;;  %v612_v41 = vrot.slane %v611_v36, 4  ;;  %v619_v43 = vrot.slane %v618_v37, 4  ;;  %v625_v44 = vsel %vm90_vm0, %v567_v62, 0.0 }
  0x4f   :  { %v603_v38 = vadd.f32 %v602_v32, %v601_v17  ;;  %v634_v39 = vmul.f32 0.5, %v596_v31  ;;  %v607_v40 = vrot.slane %v606_v33, 2  ;;  %317 = vmatpush1.xpose.msra.mxu1 %v218_v24  ;;  %380 = vmatprep.mubr.f32.mxu1 %v220_v30  ;;  %v648_v42 = vcombine.low %v632_v29, %v633_v35 }
  0x50   :  { %311 = vmatmul.mubr.f32.vlgmr.msra.gmra.mrb[0].mxu0 %v211_v12  ;;  %456 = vmatprep.subr.mxu1 %v237_v34  ;;  %v613_v47 = vadd.f32 %v612_v41, %v611_v36  ;;  %v626_v48 = vrot.slane %v625_v44, 4  ;;  %v620_v50 = vadd.f32 %v619_v43, %v618_v37  ;;  %v1219_v30 = vmov 0.0  }
  0x51   :  { %v635_v45 = vmul.f32 0.5, %v603_v38  ;;  %v608_v46 = vadd.f32 %v607_v40, %v606_v33  ;;  %387 = vmatpush1.xpose.msra.mxu0 %v228_v20  ;;  %450 = vmatprep.mubr.f32.mxu0 %v236_v27  ;;  %v656_v49 = vrot.slane %v648_v42, %v1264_v5  ;;  %41 = vst.msk [vmem:[#allocation2] sm:$0x3] %vm40_vm1, %v1219_v30  ;;  %42 = vst.msk [vmem:[#allocation3] sm:$0x3] %vm40_vm1, %v1219_v30 }
  0x52   :  { %381 = vmatmul.mubr.f32.vlgmr.msra.gmra.mrb[0].mxu1 %v218_v24  ;;  %v614_v52 = vrot.slane %v613_v47, 2  ;;  %v627_v53 = vadd.f32 %v626_v48, %v625_v44  ;;  %v621_v54 = vrot.slane %v620_v50, 2  ;;  %v1019_v42 = vand.u32 127, %v52_v0 }
  0x53   :  { %v649_v15 = vcombine.low %v634_v39, %v635_v45  ;;  %v609_v51 = vrot.slane %v608_v46, 1  ;;  %457 = vmatpush1.xpose.msra.mxu1 %v235_v7  ;;  %520 = vmatprep.mubr.f32.mxu1 %v237_v34 }
  0x54   :  { %451 = vmatmul.mubr.f32.vlgmr.msra.gmra.mrb[2].mxu0 %v228_v20  ;;  %v615_v56 = vadd.f32 %v614_v52, %v613_v47  ;;  %v628_v57 = vrot.slane %v627_v53, 2  ;;  %v622_v58 = vadd.f32 %v621_v54, %v620_v50  ;;  %vm1020_vm2 = vcmp.eq.s32.totalorder %v1261_v3, %v1019_v42 }
  0x55   :  { %v663_v25 = vrot.slane %v649_v15, %v1264_v5  ;;  %v610_v55 = vadd.f32 %v609_v51, %v608_v46  ;;  %v1118_v43 = vsel %vm1020_vm2, 1.0, %v1219_v30 }
  0x56   :  { %521 = vmatmul.mubr.f32.vlgmr.msra.gmra.mrb[2].mxu1 %v235_v7  ;;  %v616_v60 = vrot.slane %v615_v56, 1  ;;  %v629_v61 = vadd.f32 %v628_v57, %v627_v53  ;;  %v623_v62 = vrot.slane %v622_v58, 1 }
  0x57   :  { %v664_v59 = vcombine.low %v656_v49, %v663_v25  ;;  %v636_v2 = vmul.f32 0.5, %v610_v55 }
  0x58   :  { %v617_v1 = vadd.f32 %v616_v60, %v615_v56  ;;  %v630_v16 = vrot.slane %v629_v61, 1  ;;  %v624_v4 = vadd.f32 %v623_v62, %v622_v58  ;;  %v43_v37 = vld [vmem:[#allocation2] sm:$0x3]  ;;  %v529_v53 = vld [vmem:[#allocation3] sm:$0x3] }
  0x59   :  { %v684_v63 = vsub.f32 %v1270_v8, %v664_v59 }
  0x5a   :  { %v631_v11 = vadd.f32 %v630_v16, %v629_v61  ;;  %v637_v12 = vmul.f32 0.5, %v617_v1  ;;  %v638_v14 = vmul.f32 0.5, %v624_v4 }
  0x5b   :  { %v695_v9 = vrot.slane %v684_v63, %v1264_v5  ;;  %v688_v10 = vcombine.high %v684_v63, %v684_v63 }
  0x5c   :  { %v639_v20 = vmul.f32 0.5, %v631_v11  ;;  %v665_v21 = vcombine.low %v636_v2, %v637_v12 }
  0x5d   :  { %v703_v18 = vcombine.high %v695_v9, %v695_v9  ;;  %v702_v19 = vrot.slane %v688_v10, %v1264_v5 }
  0x5e   :  { %v666_v6 = vcombine.low %v638_v14, %v639_v20  ;;  %v673_v8 = vrot.slane %v665_v21, %v1264_v5 }
  0x5f   :  { %730 = vmatprep.subr.mxu0 %v703_v18  ;;  %v704_v22 = vcombine.high %v702_v19, %v702_v19  ;;  %794 = vmatprep.mubr.f32.mxu0 %v703_v18 }
  0x60   :  { %731 = vmatpush1.xpose.msra.mxu0 %v695_v9  ;;  %v680_v23 = vrot.slane %v666_v6, %v1264_v5 }
  0x61   :  { %800 = vmatprep.subr.mxu1 %v704_v22  ;;  %864 = vmatprep.mubr.f32.mxu1 %v704_v22 }
  0x62   :  { %801 = vmatpush1.xpose.msra.mxu1 %v702_v19  ;;  %v681_v24 = vcombine.low %v673_v8, %v680_v23 }
  0x63   :  { %795 = vmatmul.mubr.f32.vlgmr.msra.gmra.mrb[4].mxu0 %v695_v9 }
  0x64   :  { %v685_v26 = vsub.f32 %v1280_v13, %v681_v24 }
  0x65   :  { %865 = vmatmul.mubr.f32.vlgmr.msra.gmra.mrb[4].mxu1 %v702_v19 }
  0x66   :  { %v712_v17 = vrot.slane %v685_v26, %v1264_v5  ;;  %v705_v27 = vcombine.high %v685_v26, %v685_v26 }
  0x68   :  { %v720_v7 = vcombine.high %v712_v17, %v712_v17  ;;  %v719_v28 = vrot.slane %v705_v27, %v1264_v5 }
  0x6a   :  { %870 = vmatprep.subr.mxu0 %v720_v7  ;;  %v721_v29 = vcombine.high %v719_v28, %v719_v28  ;;  %934 = vmatprep.mubr.f32.mxu0 %v720_v7 }
  0x6b   :  { %871 = vmatpush1.xpose.msra.mxu0 %v712_v17 }
  0x6c   :  { %940 = vmatprep.subr.mxu1 %v721_v29  ;;  %1004 = vmatprep.mubr.f32.mxu1 %v721_v29 }
  0x6d   :  { %941 = vmatpush1.xpose.msra.mxu1 %v719_v28 }
  0x6e   :  { %935 = vmatmul.mubr.f32.vlgmr.msra.gmra.mrb[6].mxu0 %v712_v17 }
  0x70   :  { %1005 = vmatmul.mubr.f32.vlgmr.msra.gmra.mrb[6].mxu1 %v719_v28 }
 0x123   :  { %v312_v13 = vpop.f32.mrb[0].mxu0 }
 0x124   :  { %v314_v31 = vpop.f32.mrb[1].mxu0 }
 0x125   :  { %v382_v32 = vpop.f32.mrb[0].mxu1 }
 0x126   :  { %v383_v33 = vadd.f32 %v382_v32, %v312_v13  ;;  %v384_v5 = vpop.f32.mrb[1].mxu1 }
 0x127   :  { %v452_v34 = vpop.f32.mrb[2].mxu0 }
 0x128   :  { %v453_v35 = vadd.f32 %v452_v34, %v383_v33  ;;  %v454_v36 = vpop.f32.mrb[3].mxu0 }
 0x129   :  { %v522_v38 = vpop.f32.mrb[2].mxu1 }
 0x12a   :  { %v523_v39 = vadd.f32 %v522_v38, %v453_v35  ;;  %v524_v40 = vpop.f32.mrb[3].mxu1 }
 0x12c   :  { %v526_v41 = vadd.f32 %v523_v39, %v43_v37 }
 0x12e   :  { %528 = vst.msk [vmem:[#allocation2] sm:$0x3] %vm40_vm1, %v526_v41 }
 0x135   :  { %v1353_v45 = vld [vmem:[#allocation2] sm:$0x3] }
 0x136   :  { %v796_v44 = vpop.f32.mrb[4].mxu0  ;;  %v1023_v47 = vmul.f32 %v1118_v43, %v1353_v45 }
 0x137   :  { %v798_v46 = vpop.f32.mrb[5].mxu0 }
 0x138   :  { %v866_v48 = vpop.f32.mrb[4].mxu1  ;;  %v1024_v15 = vsel %vm40_vm1, %v1023_v47, 0.0 }
 0x139   :  { %v867_v49 = vadd.f32 %v866_v48, %v796_v44  ;;  %v868_v50 = vpop.f32.mrb[5].mxu1  ;;  %1025 = vadd.xlane.f32.xlu0 %v1024_v15  ;;  %v1027_v59 = vrot.slane %v1024_v15, 4 }
 0x13b   :  { %v1028_v61 = vadd.f32 %v1027_v59, %v1024_v15 }
 0x13d   :  { %v1029_v63 = vrot.slane %v1028_v61, 2 }
 0x13f   :  { %v1030_v16 = vadd.f32 %v1029_v63, %v1028_v61 }
 0x141   :  { %v936_v51 = vpop.f32.mrb[6].mxu0  ;;  %v1031_v4 = vrot.slane %v1030_v16, 1 }
 0x142   :  { %v937_v52 = vadd.f32 %v936_v51, %v867_v49  ;;  %v938_v0 = vpop.f32.mrb[7].mxu0 }
 0x143   :  { %v1006_v54 = vpop.f32.mrb[6].mxu1  ;;  %v1032_v11 = vadd.f32 %v1031_v4, %v1030_v16 }
 0x144   :  { %v1007_v25 = vadd.f32 %v1006_v54, %v937_v52  ;;  %v1008_v3 = vpop.f32.mrb[7].mxu1 }
 0x145   :  { %vm1045_vm5 = vcmp.eq.f32.partialorder %v1032_v11, inf  ;;  %v1048_v27 = vand.u32 2147483648, %v1032_v11  ;;  %vm1047_vm7 = vcmp.eq.f32.partialorder %v1032_v11, 0.0 }
 0x146   :  { %v1010_v55 = vadd.f32 %v1007_v25, %v529_v53 }
 0x148   :  { %1011 = vst.msk [vmem:[#allocation3] sm:$0x3] %vm40_vm1, %v1010_v55 }
 0x14f   :  { %v1055_v56 = vld [vmem:[#allocation3] sm:$0x3] }
 0x150   :  { %v1056_v57 = vmul.f32 %v1118_v43, %v1055_v56 }
 0x152   :  { %v1057_v58 = vsel %vm40_vm1, %v1056_v57, 0.0 }
 0x153   :  { %1058 = vadd.xlane.f32.xlu0 %v1057_v58  ;;  %v1060_v60 = vrot.slane %v1057_v58, 4 }
 0x155   :  { %v1061_v62 = vadd.f32 %v1060_v60, %v1057_v58 }
 0x157   :  { %v1062_v1 = vrot.slane %v1061_v62, 2 }
 0x159   :  { %v1063_v2 = vadd.f32 %v1062_v1, %v1061_v62 }
 0x15b   :  { %v1064_v10 = vrot.slane %v1063_v2, 1 }
 0x15d   :  { %v1065_v12 = vadd.f32 %v1064_v10, %v1063_v2 }
 0x15f   :  { %vm1078_vm6 = vcmp.eq.f32.partialorder %v1065_v12, inf  ;;  %v1081_v29 = vand.u32 2147483648, %v1065_v12  ;;  %vm1080_vm8 = vcmp.eq.f32.partialorder %v1065_v12, 0.0 }
 0x1c6   :  { %v1026_v9 = vpop.xlane.xlu0 %1025 }
 0x1c7   :  { %1128 = vrsqrt.f32 %v1026_v9  ;;  %vm1035_vm3 = vcmp.eq.f32.partialorder %v1026_v9, inf  ;;  %v1038_v6 = vand.u32 2147483648, %v1026_v9  ;;  %vm1037_vm4 = vcmp.eq.f32.partialorder %v1026_v9, 0.0 }
 0x1c8   :  { %1130 = vrsqrt.f32 %v1032_v11 }
 0x1c9   :  { %1132 = vrsqrt.f32 %v1065_v12 }
 0x1d1   :  { %v1129_v14 = vpop.eup %1128 }
 0x1d2   :  { %v1034_v18 = vmul.f32 %v1129_v14, %v1026_v9  ;;  %v1131_v20 = vpop.eup %1130 }
 0x1d3   :  { %v1133_v21 = vpop.eup %1132  ;;  %v1044_v8 = vmul.f32 %v1131_v20, %v1032_v11 }
 0x1d4   :  { %v1036_v22 = vsel %vm1035_vm3, %v1026_v9, %v1034_v18  ;;  %v1077_v23 = vmul.f32 %v1133_v21, %v1065_v12 }
 0x1d5   :  { %v1039_v24 = vsel %vm1037_vm4, %v1038_v6, %v1036_v22  ;;  %v1046_v26 = vsel %vm1045_vm5, %v1032_v11, %v1044_v8 }
 0x1d6   :  { %v1040_v17 = vadd.f32 1e-06, %v1039_v24  ;;  %v1079_v7 = vsel %vm1078_vm6, %v1065_v12, %v1077_v23  ;;  %v1049_v13 = vsel %vm1047_vm7, %v1048_v27, %v1046_v26 }
 0x1d7   :  { %v1082_v32 = vsel %vm1080_vm8, %v1081_v29, %v1079_v7  ;;  %v1050_v34 = vadd.f32 1e-06, %v1049_v13 }
 0x1d8   :  { %v1083_v36 = vadd.f32 1e-06, %v1082_v32 }
 0x1e0   :  { %v1059_v19 = vpop.xlane.xlu0 %1058 }
 0x1e1   :  { %1134 = vrsqrt.f32 %v1059_v19  ;;  %vm1068_vm9 = vcmp.eq.f32.partialorder %v1059_v19, inf  ;;  %v1071_v31 = vand.u32 2147483648, %v1059_v19  ;;  %vm1070_vm10 = vcmp.eq.f32.partialorder %v1059_v19, 0.0 }
 0x1e2   :  { %1136 = vrcp.f32 %v1040_v17 }
 0x1eb   :  { %v1135_v28 = vpop.eup %1134 }
 0x1ec   :  { %v1067_v30 = vmul.f32 %v1135_v28, %v1059_v19  ;;  %v1137_v37 = vpop.eup %1136 }
 0x1ed   :  { %v1053_v38 = vmul.f32 %v1137_v37, %v1353_v45 }
 0x1ee   :  { %v1069_v33 = vsel %vm1068_vm9, %v1059_v19, %v1067_v30 }
 0x1ef   :  { %v1072_v5 = vsel %vm1070_vm10, %v1071_v31, %v1069_v33 }
 0x1f0   :  { %v1073_v35 = vadd.f32 1e-06, %v1072_v5 }
 0x1f2   :  { %1138 = vrcp.f32 %v1073_v35 }
 0x1f3   :  { %1140 = vrcp.f32 %v1050_v34 }
 0x1f4   :  { %1142 = vrcp.f32 %v1083_v36 }
 0x1fc   :  { %v1139_v39 = vpop.eup %1138 }
 0x1fd   :  { %v1141_v40 = vpop.eup %1140  ;;  %v1086_v41 = vmul.f32 %v1139_v39, %v1055_v56 }
 0x1fe   :  { %v1143_v42 = vpop.eup %1142  ;;  %v1054_v43 = vmul.f32 %v1141_v40, %v1053_v38 }
 0x1ff   :  { %v1087_v44 = vmul.f32 %v1143_v42, %v1086_v41 }
 0x201   :  { %v1088_v46 = vmul.f32 %v1087_v44, %v1054_v43 }
 0x203   :  { %v1089_v47 = vsel %vm40_vm1, %v1088_v46, 0.0 }
 0x204   :  { %1090 = vadd.xlane.f32.xlu1 %v1089_v47 }
 0x291   :  { %v1091_v48 = vpop.xlane.xlu1 %1090 }
 0x292   :  { %v1092_v49 = vsel %vm90_vm0, %v1091_v48, 0.0 }
 0x293   :  { %v1093_v50 = vrot.slane %v1092_v49, 4 }
 0x295   :  { %v1094_v15 = vadd.f32 %v1093_v50, %v1092_v49 }
 0x297   :  { %v1095_v51 = vrot.slane %v1094_v15, 2 }
 0x299   :  { %v1096_v52 = vadd.f32 %v1095_v51, %v1094_v15 }
 0x29b   :  { %v1097_v0 = vrot.slane %v1096_v52, 1 }
 0x29d   :  { %v1098_v45 = vadd.f32 %v1097_v0, %v1096_v52 }
 0x29f   :  { %v1099_v53 = vmul.f32 9.536743e-07, %v1098_v45 }
 0x2a1   :  { %1101 = vst.msk [vmem:[#allocation9] sm:$0x1] %vm1100_vm11, %v1099_v53 }
 0x2a2   :  { %1199 = shalt.err (!%p1196_p6)
}
 0x2a3   :  { %s1200_s9 = scalar_lea.hbm %s1376_s2, 16 }
 0x2a4   :  { %p1201_p7 = scmp.ne.s32.totalorder %s1376_s2, %s1200_s9  ;;  %p1204_p8 = scmp.lt.u32.totalorder %s1200_s9, %s1376_s2 }
 0x2a6   :  { %p1206_p9 = pnand %p1204_p8, %p1201_p7 }
 0x2a8   :  { %1209 = shalt.err (!%p1206_p9)
}
 0x2a9   :  { %1111 = dma.vmem_to_hbm [thread:$0]  %s1109_s4, 16, %s1376_s2, [#allocation6]  }
 0x2aa   :  { %1214 = dma.done.wait [#allocation6], 16  }
 0x2ab   :  { %1215 = vsyncadd [#allocation6], 4294967280 }
 0x2ac   :  { %1115 = vsyncpa [#allocation5], 1 }
 0x2ad   :  { %1116 = vsyncpa [#allocation8], 1 }
 0x2ae   :  { %1117 = vsyncpa [#allocation6], 1 }

</bundles_post_ra>
